<compile_context>
chip_gen: v6e
topology: v6e:2x2x1
jax: 0.10.0
libtpu: 0.0.40
codegen_flags: <defaults>
</compile_context>

<pallas_src>
import functools

import jax
import jax.numpy as jnp
from jax import lax
from jax.experimental import pallas as pl
from jax.experimental.pallas import tpu as pltpu

BN_EPS = 1e-5


def cell_zero_kernel(g_ref, h_ref, hin_ref, w_ref, gamma_ref, beta_ref, s_ref,
                     out_ref):
    """Fused base-ops + Linear + BatchNorm1d(train) + ReLU + weighted mixture.

    g_ref     : (N, N)      adjacency (with self loops)
    h_ref     : (N, D)      current node features
    hin_ref   : (N, D)      layer-input node features
    w_ref     : (K*D, K*D)  block-diagonal, block k = W_k^T (pre-transposed)
    gamma_ref : (1, K*D)    packed BN gamma
    beta_ref  : (1, K*D)    packed BN beta
    s_ref     : (K*D, D)    reducer, block k = wmix_k * I_D
    out_ref   : (N, D)
    """
    g = g_ref[...]
    h = h_ref[...]
    hin = hin_ref[...]

    # --- candidate graph ops, computed in-kernel ----------------------------
    # TODO(synk): MIXED_OPS / PRE_OPS registry is not in the provided source;
    # a representative 4-op candidate set (gcn / identity / skip / sum) is
    # hard-coded here as the stand-in.
    deg = jnp.maximum(jnp.sum(g, axis=1, keepdims=True), 1.0)
    gcn = jnp.dot(g, h, preferred_element_type=jnp.float32) / deg

    # Pack the K op outputs along the lane axis: (N, K*D) = one (8,128) vreg.
    x = jnp.concatenate([gcn, h, hin, h + hin], axis=1)

    # --- Linear for all K ops: one full-lane-width MXU matmul ---------------
    # (Linear bias omitted: cancelled exactly by the BN mean subtraction.)
    y = jnp.dot(x, w_ref[...], preferred_element_type=jnp.float32)

    # --- BatchNorm1d, training-mode biased batch statistics per column ------
    inv_n = 1.0 / x.shape[0]
    mean = jnp.sum(y, axis=0, keepdims=True) * inv_n
    ex2 = jnp.sum(y * y, axis=0, keepdims=True) * inv_n
    var = jnp.maximum(ex2 - mean * mean, 0.0)           # cancellation guard
    y = (y - mean) * lax.rsqrt(var + BN_EPS)
    y = y * gamma_ref[...] + beta_ref[...]

    # --- ReLU, then weighted K-group reduce on the idle MXU -----------------
    y = jnp.maximum(y, 0.0)
    out_ref[...] = jnp.dot(y, s_ref[...], preferred_element_type=jnp.float32)


@jax.jit
def cell_zero_forward(g, h, h_in, wmix, lin_w, bn_gamma, bn_beta):
    """g (N,N), h/h_in (N,D), wmix (K,), lin_w (K,D,D) torch (out,in) layout,
    bn_gamma/bn_beta (K,1,D). Returns (N, D)."""
    N, D = h.shape
    K = lin_w.shape[0]
    KD = K * D

    # Static parameter packing (layout plumbing only; a handful of fused ops
    # under this jit — would be hoisted/cached across calls in real use).
    w_t = jnp.transpose(lin_w, (0, 2, 1)).astype(jnp.float32)          # W_k^T
    w_big = jnp.einsum('kl,kij->kilj', jnp.eye(K, dtype=jnp.float32),
                       w_t).reshape(KD, KD)                            # blkdiag
    gamma = bn_gamma.reshape(1, KD).astype(jnp.float32)
    beta = bn_beta.reshape(1, KD).astype(jnp.float32)
    s_mat = (wmix.astype(jnp.float32)[:, None, None]
             * jnp.eye(D, dtype=jnp.float32)[None, :, :]).reshape(KD, D)

    return pl.pallas_call(
        cell_zero_kernel,
        out_shape=jax.ShapeDtypeStruct((N, D), jnp.float32),
        in_specs=[pl.BlockSpec(memory_space=pltpu.MemorySpace.VMEM)] * 7,
        out_specs=pl.BlockSpec(memory_space=pltpu.MemorySpace.VMEM),
    )(g.astype(jnp.float32), h.astype(jnp.float32), h_in.astype(jnp.float32),
      w_big, gamma, beta, s_mat)


# ----------------------------- validation -----------------------------------
def base_op_outputs(g, h, h_in):
    """Stand-in candidate graph ops, stacked to (K, N, D)."""
    deg = jnp.maximum(jnp.sum(g, axis=1, keepdims=True), 1.0)
    return jnp.stack([(g @ h) / deg, h, h_in, h + h_in], axis=0)


def reference_forward(wmix, x_ops, lin_w, lin_b, bn_gamma, bn_beta):
    """Pure-JAX reference mirroring the PyTorch forward (WITH Linear bias)."""
    out = 0.0
    for k in range(x_ops.shape[0]):
        y = x_ops[k] @ lin_w[k].T + lin_b[k][0]
        mean = jnp.mean(y, axis=0, keepdims=True)
        var = jnp.mean((y - mean) ** 2, axis=0, keepdims=True)
        y = (y - mean) / jnp.sqrt(var + BN_EPS)
        y = y * bn_gamma[k][0] + bn_beta[k][0]
        y = jnp.maximum(y, 0.0)
        out = out + wmix[k] * y
    return out


if __name__ == "__main__":
    key = jax.random.PRNGKey(0)
    k_adj, k_h, k_hin, k_alpha, k_w, k_b = jax.random.split(key, 6)

    N = 8            # number of nodes (== BatchNorm1d batch dim)
    D = 32           # feature_dim
    K = 4            # number of candidate ops (gcn / identity / skip / sum)

    # Graph + node features
    adj = (jax.random.uniform(k_adj, (N, N)) < 0.4).astype(jnp.float32)
    g = jnp.maximum(adj, jnp.eye(N, dtype=jnp.float32))       # add self loops
    h = jax.random.normal(k_h, (N, D), dtype=jnp.float32)
    h_in = jax.random.normal(k_hin, (N, D), dtype=jnp.float32)

    # Architecture mixing weights (Cell_Zero passes weights[0] to its MixedOp)
    arch_weights = jax.nn.softmax(
        jax.random.normal(k_alpha, (1, K), dtype=jnp.float32), axis=-1)
    wmix = arch_weights[0]

    # Per-op Linear params, PyTorch-style init: U(-1/sqrt(D), 1/sqrt(D)).
    # (lin_b is used only by the reference: it cancels under training-mode BN.)
    bound = 1.0 / jnp.sqrt(jnp.float32(D))
    lin_w = jax.random.uniform(k_w, (K, D, D), jnp.float32, -bound, bound)
    lin_b = jax.random.uniform(k_b, (K, 1, D), jnp.float32, -bound, bound)

    # Per-op BatchNorm1d params (torch defaults: gamma=1, beta=0)
    bn_gamma = jnp.ones((K, 1, D), jnp.float32)
    bn_beta = jnp.zeros((K, 1, D), jnp.float32)

    out = cell_zero_forward(g, h, h_in, wmix, lin_w, bn_gamma, bn_beta)
    out = jax.block_until_ready(out)

    x_ops = base_op_outputs(g, h, h_in)                       # (K, N, D)
    ref = reference_forward(wmix, x_ops, lin_w, lin_b, bn_gamma, bn_beta)

    assert out.shape == (N, D)
    assert jnp.allclose(out, ref, atol=1e-4, rtol=1e-4), "mismatch vs reference"

    print("KERNEL_OK")
</pallas_src>

<mosaic_0001>
module attributes {stable_mosaic.version = 11 : i64} {
  func.func @cell_zero_kernel(%arg0: memref<8x8xf32, #tpu.memory_space<vmem>>, %arg1: memref<8x32xf32, #tpu.memory_space<vmem>>, %arg2: memref<8x32xf32, #tpu.memory_space<vmem>>, %arg3: memref<128x128xf32, #tpu.memory_space<vmem>>, %arg4: memref<1x128xf32, #tpu.memory_space<vmem>>, %arg5: memref<1x128xf32, #tpu.memory_space<vmem>>, %arg6: memref<128x32xf32, #tpu.memory_space<vmem>>, %arg7: memref<8x32xf32, #tpu.memory_space<vmem>>) attributes {dimension_semantics = [], scalar_prefetch = 0 : i64, scratch_operands = 0 : i64, tpu.core_type = #tpu.core_type<tc>} {
    %c0 = arith.constant 0 : index
    %c0_0 = arith.constant 0 : index
    %0 = vector.load %arg0[%c0, %c0_0] : memref<8x8xf32, #tpu.memory_space<vmem>>, vector<8x8xf32>
    %c0_1 = arith.constant 0 : index
    %c0_2 = arith.constant 0 : index
    %1 = vector.load %arg1[%c0_1, %c0_2] : memref<8x32xf32, #tpu.memory_space<vmem>>, vector<8x32xf32>
    %c0_3 = arith.constant 0 : index
    %c0_4 = arith.constant 0 : index
    %2 = vector.load %arg2[%c0_3, %c0_4] : memref<8x32xf32, #tpu.memory_space<vmem>>, vector<8x32xf32>
    %cst = arith.constant dense<0.000000e+00> : vector<8xf32>
    %3 = vector.multi_reduction <add>, %0, %cst [1] : vector<8x8xf32> to vector<8xf32>
    %4 = vector.shape_cast %3 : vector<8xf32> to vector<8x1xf32>
    %cst_5 = arith.constant 1.000000e+00 : f32
    %5 = vector.broadcast %cst_5 : f32 to vector<8x1xf32>
    %6 = arith.maximumf %4, %5 : vector<8x1xf32>
    %cst_6 = arith.constant dense<0.000000e+00> : vector<8x32xf32>
    %7 = tpu.matmul %0, %1, %cst_6 {dimension_numbers = #tpu.dot_dimension_numbers<[1], [0], [0], [1], [0, 0, 1, 1], [], []>} : vector<8x8xf32>, vector<8x32xf32>, vector<8x32xf32> -> vector<8x32xf32>
    %8 = vector.broadcast %6 : vector<8x1xf32> to vector<8x32xf32>
    %9 = arith.divf %7, %8 : vector<8x32xf32>
    %10 = arith.addf %1, %2 : vector<8x32xf32>
    %11 = tpu.concatenate %9, %1, %2, %10 in 1 : vector<8x32xf32>, vector<8x32xf32>, vector<8x32xf32>, vector<8x32xf32> -> vector<8x128xf32>
    %c0_7 = arith.constant 0 : index
    %c0_8 = arith.constant 0 : index
    %12 = vector.load %arg3[%c0_7, %c0_8] : memref<128x128xf32, #tpu.memory_space<vmem>>, vector<128x128xf32>
    %cst_9 = arith.constant dense<0.000000e+00> : vector<8x128xf32>
    %13 = tpu.matmul %11, %12, %cst_9 {dimension_numbers = #tpu.dot_dimension_numbers<[1], [0], [0], [1], [0, 0, 1, 1], [], []>} : vector<8x128xf32>, vector<128x128xf32>, vector<8x128xf32> -> vector<8x128xf32>
    %cst_10 = arith.constant dense<0.000000e+00> : vector<128xf32>
    %14 = vector.multi_reduction <add>, %13, %cst_10 [0] : vector<8x128xf32> to vector<128xf32>
    %15 = vector.shape_cast %14 : vector<128xf32> to vector<1x128xf32>
    %cst_11 = arith.constant 1.250000e-01 : f32
    %16 = vector.broadcast %cst_11 : f32 to vector<1x128xf32>
    %17 = arith.mulf %15, %16 : vector<1x128xf32>
    %18 = arith.mulf %13, %13 : vector<8x128xf32>
    %cst_12 = arith.constant dense<0.000000e+00> : vector<128xf32>
    %19 = vector.multi_reduction <add>, %18, %cst_12 [0] : vector<8x128xf32> to vector<128xf32>
    %20 = vector.shape_cast %19 : vector<128xf32> to vector<1x128xf32>
    %cst_13 = arith.constant 1.250000e-01 : f32
    %21 = vector.broadcast %cst_13 : f32 to vector<1x128xf32>
    %22 = arith.mulf %20, %21 : vector<1x128xf32>
    %23 = arith.mulf %17, %17 : vector<1x128xf32>
    %24 = arith.subf %22, %23 : vector<1x128xf32>
    %cst_14 = arith.constant 0.000000e+00 : f32
    %25 = vector.broadcast %cst_14 : f32 to vector<1x128xf32>
    %26 = arith.maximumf %24, %25 : vector<1x128xf32>
    %27 = vector.broadcast %17 : vector<1x128xf32> to vector<8x128xf32>
    %28 = arith.subf %13, %27 : vector<8x128xf32>
    %cst_15 = arith.constant 9.99999974E-6 : f32
    %29 = vector.broadcast %cst_15 : f32 to vector<1x128xf32>
    %30 = arith.addf %26, %29 : vector<1x128xf32>
    %31 = math.rsqrt %30 : vector<1x128xf32>
    %32 = vector.broadcast %31 : vector<1x128xf32> to vector<8x128xf32>
    %33 = arith.mulf %28, %32 : vector<8x128xf32>
    %c0_16 = arith.constant 0 : index
    %c0_17 = arith.constant 0 : index
    %34 = vector.load %arg4[%c0_16, %c0_17] : memref<1x128xf32, #tpu.memory_space<vmem>>, vector<1x128xf32>
    %35 = vector.broadcast %34 : vector<1x128xf32> to vector<8x128xf32>
    %36 = arith.mulf %33, %35 : vector<8x128xf32>
    %c0_18 = arith.constant 0 : index
    %c0_19 = arith.constant 0 : index
    %37 = vector.load %arg5[%c0_18, %c0_19] : memref<1x128xf32, #tpu.memory_space<vmem>>, vector<1x128xf32>
    %38 = vector.broadcast %37 : vector<1x128xf32> to vector<8x128xf32>
    %39 = arith.addf %36, %38 : vector<8x128xf32>
    %cst_20 = arith.constant 0.000000e+00 : f32
    %40 = vector.broadcast %cst_20 : f32 to vector<8x128xf32>
    %41 = arith.maximumf %39, %40 : vector<8x128xf32>
    %c0_21 = arith.constant 0 : index
    %c0_22 = arith.constant 0 : index
    %42 = vector.load %arg6[%c0_21, %c0_22] : memref<128x32xf32, #tpu.memory_space<vmem>>, vector<128x32xf32>
    %cst_23 = arith.constant dense<0.000000e+00> : vector<8x32xf32>
    %43 = tpu.matmul %41, %42, %cst_23 {dimension_numbers = #tpu.dot_dimension_numbers<[1], [0], [0], [1], [0, 0, 1, 1], [], []>} : vector<8x128xf32>, vector<128x32xf32>, vector<8x32xf32> -> vector<8x32xf32>
    %c0_24 = arith.constant 0 : index
    %c0_25 = arith.constant 0 : index
    %44 = vector.load %arg7[%c0_24, %c0_25] : memref<8x32xf32, #tpu.memory_space<vmem>>, vector<8x32xf32>
    tpu.vector_store %arg7[%c0_24, %c0_25], %43 {strides = array<i32>} : memref<8x32xf32, #tpu.memory_space<vmem>>, vector<8x32xf32>,
    return
  }
}

</mosaic_0001>

<bundles_post_ra>
// kernel: cell_zero_forward.1
= control target key start
LH: loop header
LB: loop body
LE: loop exit
PB: predicated region body
PF: predicated region fallthrough
CT: control target
= control target key end

     0   :  { %vm30_vm0 = vcmask 64512   ;;  %v501_v3 = vmov 0.0   ;;  %vm502_vm1 = vmmov 0   ;;  %s702_s0 = inlined_call_operand.vmem [shape: f32[8,8], index: 0, kind: input, shape index: {}]   ;;  %s703_s1 = inlined_call_operand.vmem [shape: f32[8,32], index: 1, kind: input, shape index: {}]   ;;  %s704_s2 = inlined_call_operand.vmem [shape: f32[8,32], index: 2, kind: input, shape index: {}]   ;;  %s705_s3 = inlined_call_operand.vmem [shape: f32[128,128], index: 3, kind: input, shape index: {}]   ;;  %s706_s4 = inlined_call_operand.vmem [shape: f32[1,128], index: 4, kind: input, shape index: {}]   ;;  %s707_s5 = inlined_call_operand.vmem [shape: f32[1,128], index: 5, kind: input, shape index: {}]   ;;  %s708_s6 = inlined_call_operand.vmem [shape: f32[128,32], index: 6, kind: input, shape index: {}]   ;;  %s709_s7 = inlined_call_operand.hbm [shape: f32[8,32], index: 7, kind: output, shape index: {}]  }
   0x1   :  { %v28_v0 = vld [vmem:[%s703_s1] sm:$0xff]  ;;  %394 = vmatprep.subr.mxu0 %v501_v3  ;;  %396 = vmatprep.mubr.msk.f32.mxu0 %vm502_vm1, %v501_v3  ;;  %v144_v5 = vld [vmem:[%s705_s3 + $0x78] sm:$0xff] }
   0x2   :  { %v27_v1 = vld [vmem:[%s702_s0] sm:$0xff]  ;;  %395 = vmatpush3.msra.mxu0 %v28_v0 }
   0x3   :  { %v29_v2 = vld [vmem:[%s704_s2] sm:$0xff]  ;;  %v31_v4 = vsel %vm30_vm0, %v27_v1, 0.0 }
   0x4   :  { %32 = vadd.xlane.f32.xlu0 %v31_v4 }
   0x5   :  { %12 = vsyncpa [#allocation3], 0  ;;  %397 = vmatmul.mubr.msk.f32.vlgmr.msra.gmra.mxu0 %vm30_vm0, %v27_v1  ;;  %s503_s0 = smov 64   ;;  %v110_v6 = vadd.f32 %v29_v2, %v28_v0  ;;  %399 = vmatprep.subr.mxu1 %v501_v3  ;;  %v143_v7 = vld [vmem:[%s705_s3 + $0x70] sm:$0xff]  ;;  %v142_v8 = vld [vmem:[%s705_s3 + $0x68] sm:$0xff]  ;;  %s504_s11 = smov 96  }
   0x6   :  { %116 = vrot.lane.b32.xlu1 %v29_v2, %s503_s0  ;;  %431 = vmatprep.mubr.msk.f32.mxu1 %vm502_vm1, %v501_v3  ;;  %v141_v9 = vld [vmem:[%s705_s3 + $0x60] sm:$0xff]  ;;  %v140_v10 = vld [vmem:[%s705_s3 + $0x58] sm:$0xff]  ;;  %v139_v11 = vld [vmem:[%s705_s3 + $0x50] sm:$0xff]  ;;  %s505_s28 = smov 32   ;;  %vm123_vm2 = vcmask 261120   ;;  %vm125_vm3 = vcmask 523264  }
   0x7   :  { %400 = vmatpush3.msra.mxu1 %v144_v5  ;;  %434 = vmatprep.subr.mxu0 %v501_v3  ;;  %v138_v12 = vld [vmem:[%s705_s3 + $0x48] sm:$0xff]  ;;  %v137_v13 = vld [vmem:[%s705_s3 + $0x40] sm:$0xff]  ;;  %v136_v14 = vld [vmem:[%s705_s3 + $0x38] sm:$0xff]  ;;  %vm127_vm4 = vcmask 785408   ;;  %s506_s20 = smov [#allocation2]  }
   0x8   :  { %401 = vmatprep.subr.mxu1 %v501_v3  ;;  %466 = vmatprep.mubr.msk.f32.mxu0 %vm502_vm1, %v501_v3  ;;  %v135_v15 = vld [vmem:[%s705_s3 + $0x30] sm:$0xff]  ;;  %v134_v16 = vld [vmem:[%s705_s3 + $0x28] sm:$0xff]  ;;  %v133_v17 = vld [vmem:[%s705_s3 + $0x20] sm:$0xff]  ;;  %s347_s21 = sshll.u32 %s506_s20, 4  ;;  %s348_s21 = int_to_ptr.vmem [resolvable:$true] %s347_s21 }
   0x9   :  { %402 = vmatpush3.msra.mxu1 %v143_v7  ;;  %v132_v18 = vld [vmem:[%s705_s3 + $0x18] sm:$0xff]  ;;  %v131_v19 = vld [vmem:[%s705_s3 + $0x10] sm:$0xff]  ;;  %v130_v20 = vld [vmem:[%s705_s3 + $0x8] sm:$0xff]  ;;  %s479_s22 = scalar_lea.vmem %s348_s21, 128  ;;  %p484_p1 = scmp.lt.s32.totalorder %s348_s21, %s348_s21 }
   0xa   :  { %120 = vrot.lane.b32.xlu1 %v110_v6, %s504_s11  ;;  %403 = vmatprep.subr.mxu1 %v501_v3  ;;  %v129_v21 = vld [vmem:[%s705_s3] sm:$0xff]  ;;  %v269_v34 = vld [vmem:[%s708_s6 + $0x78] sm:$0xff]  ;;  %v268_v35 = vld [vmem:[%s708_s6 + $0x70] sm:$0xff]  ;;  %p480_p0 = scmp.ne.s32.totalorder %s348_s21, %s479_s22  ;;  %p485_p2 = scmp.lt.s32.totalorder %s479_s22, %s479_s22 }
   0xb   :  { %404 = vmatpush3.msra.mxu1 %v142_v8  ;;  %435 = vmatpush3.msra.mxu0 %v269_v34  ;;  %v267_v36 = vld [vmem:[%s708_s6 + $0x68] sm:$0xff]  ;;  %v266_v37 = vld [vmem:[%s708_s6 + $0x60] sm:$0xff]  ;;  %v265_v38 = vld [vmem:[%s708_s6 + $0x58] sm:$0xff] }
   0xc   :  { %405 = vmatprep.subr.mxu1 %v501_v3  ;;  %436 = vmatprep.subr.mxu0 %v501_v3  ;;  %v264_v39 = vld [vmem:[%s708_s6 + $0x50] sm:$0xff]  ;;  %v263_v40 = vld [vmem:[%s708_s6 + $0x48] sm:$0xff]  ;;  %v262_v41 = vld [vmem:[%s708_s6 + $0x40] sm:$0xff]  ;;  %p486_p3 = por %p485_p2, %p484_p1 }
   0xd   :  { %406 = vmatpush3.msra.mxu1 %v141_v9  ;;  %437 = vmatpush3.msra.mxu0 %v268_v35  ;;  %v261_v42 = vld [vmem:[%s708_s6 + $0x38] sm:$0xff]  ;;  %v260_v43 = vld [vmem:[%s708_s6 + $0x30] sm:$0xff]  ;;  %v259_v44 = vld [vmem:[%s708_s6 + $0x28] sm:$0xff] }
   0xe   :  { %407 = vmatprep.subr.mxu1 %v501_v3  ;;  %438 = vmatprep.subr.mxu0 %v501_v3  ;;  %v258_v45 = vld [vmem:[%s708_s6 + $0x20] sm:$0xff]  ;;  %v257_v46 = vld [vmem:[%s708_s6 + $0x18] sm:$0xff]  ;;  %v256_v47 = vld [vmem:[%s708_s6 + $0x10] sm:$0xff]  ;;  %p487_p4 = pnand %p486_p3, %p480_p0 }
   0xf   :  { %408 = vmatpush3.msra.mxu1 %v140_v10  ;;  %439 = vmatpush3.msra.mxu0 %v267_v36  ;;  %v255_v48 = vld [vmem:[%s708_s6 + $0x8] sm:$0xff]  ;;  %v254_v49 = vld [vmem:[%s708_s6] sm:$0xff] }
  0x10   :  { %409 = vmatprep.subr.mxu1 %v501_v3  ;;  %440 = vmatprep.subr.mxu0 %v501_v3  ;;  %v356_v9 = vld [vmem:[%s706_s4] ss:$0 sm:$0xff] }
  0x11   :  { %410 = vmatpush3.msra.mxu1 %v139_v11  ;;  %441 = vmatpush3.msra.mxu0 %v266_v37  ;;  %v357_v11 = vld [vmem:[%s707_s5] ss:$0 sm:$0xff] }
  0x12   :  { %411 = vmatprep.subr.mxu1 %v501_v3  ;;  %442 = vmatprep.subr.mxu0 %v501_v3 }
  0x13   :  { %412 = vmatpush3.msra.mxu1 %v138_v12  ;;  %443 = vmatpush3.msra.mxu0 %v265_v38 }
  0x14   :  { %413 = vmatprep.subr.mxu1 %v501_v3  ;;  %444 = vmatprep.subr.mxu0 %v501_v3 }
  0x15   :  { %414 = vmatpush3.msra.mxu1 %v137_v13  ;;  %445 = vmatpush3.msra.mxu0 %v264_v39 }
  0x16   :  { %415 = vmatprep.subr.mxu1 %v501_v3  ;;  %446 = vmatprep.subr.mxu0 %v501_v3 }
  0x17   :  { %416 = vmatpush3.msra.mxu1 %v136_v14  ;;  %447 = vmatpush3.msra.mxu0 %v263_v40 }
  0x18   :  { %417 = vmatprep.subr.mxu1 %v501_v3  ;;  %448 = vmatprep.subr.mxu0 %v501_v3 }
  0x19   :  { %418 = vmatpush3.msra.mxu1 %v135_v15  ;;  %449 = vmatpush3.msra.mxu0 %v262_v41 }
  0x1a   :  { %112 = vrot.lane.b32.xlu0 %v28_v0, %s505_s28  ;;  %419 = vmatprep.subr.mxu1 %v501_v3 }
  0x1b   :  { %420 = vmatpush3.msra.mxu1 %v134_v16  ;;  %450 = vmatprep.subr.mxu0 %v501_v3 }
  0x1c   :  { %421 = vmatprep.subr.mxu1 %v501_v3  ;;  %451 = vmatpush3.msra.mxu0 %v261_v42 }
  0x1d   :  { %422 = vmatpush3.msra.mxu1 %v133_v17  ;;  %452 = vmatprep.subr.mxu0 %v501_v3 }
  0x1e   :  { %423 = vmatprep.subr.mxu1 %v501_v3  ;;  %453 = vmatpush3.msra.mxu0 %v260_v43 }
  0x1f   :  { %424 = vmatpush3.msra.mxu1 %v132_v18  ;;  %454 = vmatprep.subr.mxu0 %v501_v3 }
  0x20   :  { %425 = vmatprep.subr.mxu1 %v501_v3  ;;  %455 = vmatpush3.msra.mxu0 %v259_v44 }
  0x21   :  { %426 = vmatpush3.msra.mxu1 %v131_v19  ;;  %456 = vmatprep.subr.mxu0 %v501_v3 }
  0x22   :  { %427 = vmatprep.subr.mxu1 %v501_v3  ;;  %457 = vmatpush3.msra.mxu0 %v258_v45 }
  0x23   :  { %428 = vmatpush3.msra.mxu1 %v130_v20  ;;  %458 = vmatprep.subr.mxu0 %v501_v3 }
  0x24   :  { %429 = vmatprep.subr.mxu1 %v501_v3  ;;  %459 = vmatpush3.msra.mxu0 %v257_v46 }
  0x25   :  { %430 = vmatpush3.msra.mxu1 %v129_v21  ;;  %460 = vmatprep.subr.mxu0 %v501_v3 }
  0x26   :  { %461 = vmatpush3.msra.mxu0 %v256_v47 }
  0x27   :  { %462 = vmatprep.subr.mxu0 %v501_v3 }
  0x28   :  { %463 = vmatpush3.msra.mxu0 %v255_v48 }
  0x29   :  { %464 = vmatprep.subr.mxu0 %v501_v3 }
  0x2a   :  { %465 = vmatpush3.msra.mxu0 %v254_v49 }
  0x78   :  { %v117_v24 = vpop.permute.xlu1 %116 }
  0x7c   :  { %v121_v30 = vpop.permute.xlu1 %120 }
  0x8d   :  { %v33_v22 = vpop.xlane.xlu0 %32 }
  0x8e   :  { %v34_v23 = vmax.f32 %v33_v22, 1.0 }
  0x90   :  { %475 = vrcp.f32 %v34_v23 }
  0x91   :  { %v113_v27 = vpop.permute.xlu0 %112 }
  0x9d   :  { %v476_v25 = vpop.eup %475 }
  0xc5   :  { %v104_v26 = vpop.f32.mrf.mxu0 }
  0xc6   :  { %v109_v28 = vmul.f32 %v476_v25, %v104_v26 }
  0xc7   :  { %v398_v29 = vpop.f32.mrf.mxu0 }
  0xc8   :  { %v124_v31 = vsel %vm123_vm2, %v109_v28, %v113_v27 }
  0xc9   :  { %v126_v32 = vsel %vm125_vm3, %v124_v31, %v117_v24 }
  0xca   :  { %v128_v33 = vsel %vm127_vm4, %v126_v32, %v121_v30 }
  0xcb   :  { %432 = vmatmul.mubr.f32.vlgmr.msra.gmra.mxu1 %v128_v33 }
 0x18b   :  { %v211_v50 = vpop.f32.mrf.mxu1 }
 0x18c   :  { %v215_v51 = vrot.slane %v211_v50, 4  ;;  %v222_v52 = vmul.f32 %v211_v50, %v211_v50 }
 0x18d   :  { %v433_v53 = vpop.f32.mrf.mxu1 }
 0x18e   :  { %v216_v54 = vadd.f32 %v215_v51, %v211_v50  ;;  %v223_v55 = vrot.slane %v222_v52, 4 }
 0x190   :  { %v217_v56 = vrot.slane %v216_v54, 2  ;;  %v224_v57 = vadd.f32 %v223_v55, %v222_v52 }
 0x192   :  { %v218_v58 = vadd.f32 %v217_v56, %v216_v54  ;;  %v225_v59 = vrot.slane %v224_v57, 2 }
 0x194   :  { %v219_v60 = vrot.slane %v218_v58, 1  ;;  %v226_v61 = vadd.f32 %v225_v59, %v224_v57 }
 0x196   :  { %v220_v62 = vadd.f32 %v219_v60, %v218_v58  ;;  %v227_v63 = vrot.slane %v226_v61, 1 }
 0x198   :  { %v221_v0 = vmul.f32 0.125, %v220_v62  ;;  %v228_v1 = vadd.f32 %v227_v63, %v226_v61 }
 0x19a   :  { %v229_v2 = vmul.f32 0.125, %v228_v1  ;;  %v230_v4 = vmul.f32 %v221_v0, %v221_v0  ;;  %v233_v7 = vsub.f32 %v211_v50, %v221_v0 }
 0x19c   :  { %v231_v3 = vsub.f32 %v229_v2, %v230_v4 }
 0x19e   :  { %v232_v5 = vmax.f32 %v231_v3, 0.0 }
 0x1a0   :  { %v234_v6 = vadd.f32 1e-05, %v232_v5 }
 0x1a2   :  { %477 = vrsqrt.f32 %v234_v6 }
 0x1af   :  { %v478_v8 = vpop.eup %477 }
 0x1b0   :  { %v236_v10 = vmul.f32 %v478_v8, %v233_v7 }
 0x1b2   :  { %v244_v12 = vmul.f32 %v356_v9, %v236_v10 }
 0x1b4   :  { %v252_v13 = vadd.f32 %v357_v11, %v244_v12 }
 0x1b6   :  { %v253_v14 = vmax.f32 %v252_v13, 0.0 }
 0x1b8   :  { %467 = vmatmul.mubr.f32.vlgmr.msra.gmra.mxu0 %v253_v14 }
 0x278   :  { %v336_v15 = vpop.f32.mrf.mxu0 }
 0x279   :  { %340 = vst.msk [vmem:[#allocation2] sm:$0xff] %vm123_vm2, %v336_v15 }
 0x27a   :  { %v468_v16 = vpop.f32.mrf.mxu0 }
 0x27b   :  { %490 = shalt.err (!%p487_p4)
}
 0x27c   :  { %350 = dma.vmem_to_hbm [thread:$0]  %s348_s21, 128, %s709_s7, [#allocation3]  }
 0x27d   :  { %499 = dma.done.wait [#allocation3], 128  }
 0x27e   :  { %500 = vsyncadd [#allocation3], 4294967168 }
 0x27f   :  { %354 = vsyncpa [#allocation3], 1 }

</bundles_post_ra>
